<compile_context>
chip_gen: v6e
topology: v6e:2x2x1
jax: 0.10.0
libtpu: 0.0.40
codegen_flags: <defaults>
</compile_context>

<pallas_src>
import functools
import math

import jax
import jax.numpy as jnp
from jax import lax
from jax.experimental import pallas as pl
from jax.experimental.pallas import tpu as pltpu

_NEG_INF = float("-inf")
_PAD_GID = 2 ** 30          # sentinel graph id for padded nodes (keeps ids sorted)


def _round_up(x, m):
    return ((x + m - 1) // m) * m


# ---------------------------------------------------------------------------
# InvariantFeatures (the spec module)
# ---------------------------------------------------------------------------
def _embed(x, w, b):
    """x @ w + b in f32.  For tiny K (<= 8) use an unrolled VPU outer-product
    sum (exact f32, no K=4 MXU matmul); otherwise one MXU pass with f32 acc."""
    k = x.shape[1]
    if k <= 8:
        acc = jnp.zeros((x.shape[0], w.shape[1]), jnp.float32)
        for d in range(k):
            acc = acc + x[:, d:d + 1] * w[d:d + 1, :]
        return acc + b
    return jnp.dot(x, w, preferred_element_type=jnp.float32) + b


def _embed_kernel(x_ref, w_ref, b_ref, out_ref):
    x = x_ref[...].astype(jnp.float32)          # cast in-kernel (no host pre-cast)
    w = w_ref[...].astype(jnp.float32)
    b = b_ref[...].astype(jnp.float32)
    out_ref[...] = _embed(x, w, b).astype(out_ref.dtype)


def _embed_concat_kernel(prev_ref, x_ref, w_ref, b_ref, out_ref, *, prev_width):
    x = x_ref[...].astype(jnp.float32)
    w = w_ref[...].astype(jnp.float32)
    b = b_ref[...].astype(jnp.float32)
    emb = _embed(x, w, b)
    # Fused torch.cat([prev, emb], dim=-1): two static lane-slice stores.
    # TODO(synk): across L stacked modules this re-copies prev every call
    # (O(L^2) HBM) and prev_width is not 128-aligned (masked vst); a
    # preallocated 128-aligned feature buffer + input_output_aliases would make
    # accumulation linear, but requires a cross-module layout change.
    out_ref[:, :prev_width] = prev_ref[...].astype(out_ref.dtype)
    out_ref[:, prev_width:] = emb.astype(out_ref.dtype)


def _invariant_features_fwd(x, w, b, prev=None):
    n, f_in = x.shape
    e = w.shape[1]

    # Row tiling: 512-row f32 tiles stay far below the scoped-VMEM defaults
    # (16 MiB v5e, 32 MiB v6e/v7x) even double-buffered, and let the node axis
    # shard across v7x's two TensorCores.
    tm = n if n <= 512 else 512
    grid = (pl.cdiv(n, tm),)
    cparams = pltpu.CompilerParams(dimension_semantics=("parallel",))

    if prev is None:
        return pl.pallas_call(
            _embed_kernel,
            out_shape=jax.ShapeDtypeStruct((n, e), jnp.float32),
            grid=grid,
            in_specs=[pl.BlockSpec((tm, f_in), lambda i: (i, 0)),
                      pl.BlockSpec((f_in, e), lambda i: (0, 0)),
                      pl.BlockSpec((1, e), lambda i: (0, 0))],
            out_specs=pl.BlockSpec((tm, e), lambda i: (i, 0)),
            compiler_params=cparams,
        )(x, w, b)

    f_prev = prev.shape[1]
    kernel = functools.partial(_embed_concat_kernel, prev_width=f_prev)
    return pl.pallas_call(
        kernel,
        out_shape=jax.ShapeDtypeStruct((n, f_prev + e), jnp.float32),
        grid=grid,
        in_specs=[pl.BlockSpec((tm, f_prev), lambda i: (i, 0)),
                  pl.BlockSpec((tm, f_in), lambda i: (i, 0)),
                  pl.BlockSpec((f_in, e), lambda i: (0, 0)),
                  pl.BlockSpec((1, e), lambda i: (0, 0))],
        out_specs=pl.BlockSpec((tm, f_prev + e), lambda i: (i, 0)),
        compiler_params=cparams,
    )(prev, x, w, b)


class InvariantFeatures:
    """JAX/Pallas port of bopito InvariantFeatures (forward pass only).

    `batch` is a plain dict.  The feature named `feature_name` is embedded and
    appended (dim=-1) to `invariant_<type>_features` if present, else stored.
    """

    # TODO(synk): `self.embedding` is abstract in the reference (child classes
    # define it); a single linear layer x @ W + b stands in for it here.
    def __init__(self, feature_name, type_="node", *, weight, bias):
        self.feature_name = feature_name
        self.type = type_
        self.weight = jnp.asarray(weight, jnp.float32)              # (F_in, E)
        self.bias = jnp.asarray(bias, jnp.float32).reshape(1, -1)   # (1, E)

    def forward(self, batch):
        x = batch[self.feature_name]
        name = f"invariant_{self.type}_features"
        prev = batch.get(name)
        out = _invariant_features_fwd(x, self.weight, self.bias, prev)
        new_batch = dict(batch)
        new_batch[name] = out
        return new_batch

    __call__ = forward


# ---------------------------------------------------------------------------
# AddEdgeIndex: masked pairwise-distance kernel
# ---------------------------------------------------------------------------
def _neg_sq_dist_kernel(pos_i_ref, pos_jt_ref, gid_col_ref, gid_row_ref,
                        out_ref, *, cutoff_sq, tile_m, tile_n, ndim):
    """out[i, j] = -||p_i - p_j||^2 if (same graph, j != i, d^2 <= cutoff^2),
    else -inf.  Negated so lax.top_k consumes it without an extra N^2 pass."""
    # program_id only at the kernel top level: calling it inside a traced
    # pl.when branch leaves an un-lowerable program_id inside the cond jaxpr.
    row_start = pl.program_id(0) * tile_m
    col_start = pl.program_id(1) * tile_n

    # Cross-graph tile early-out via scalar block-endpoint reads.  PyG batch
    # vectors are contiguous (sorted) and padded ids use a large sentinel, so
    # the first/last elements are the block min/max -- no XLU reductions, no
    # int->f32 cast.
    row_lo = gid_col_ref[0, 0]
    row_hi = gid_col_ref[tile_m - 1, 0]
    col_lo = gid_row_ref[0, 0]
    col_hi = gid_row_ref[0, tile_n - 1]
    overlap = jnp.logical_and(row_lo <= col_hi, col_lo <= row_hi)

    @pl.when(jnp.logical_not(overlap))
    def _():
        out_ref[...] = jnp.full((tile_m, tile_n), _NEG_INF, jnp.float32)

    @pl.when(overlap)
    def _():
        pos_i = pos_i_ref[...]                       # (TM, D) f32
        pos_jt = pos_jt_ref[...]                     # (D, TN) f32

        # -d^2 accumulated directly on the VPU (D == 3): exact f32, no MXU
        # gram matrix, no extra negate pass.
        negd2 = jnp.zeros((tile_m, tile_n), jnp.float32)
        for d in range(ndim):
            diff = pos_i[:, d:d + 1] - pos_jt[d:d + 1, :]
            negd2 = negd2 - diff * diff

        valid = gid_col_ref[...] == gid_row_ref[...]             # same graph
        if not math.isinf(cutoff_sq):                # trace-time skip for inf
            valid = jnp.logical_and(valid, negd2 >= jnp.float32(-cutoff_sq))
        # Self-loop removal merged into the same predicate; global row/col ids
        # built from a (TM,1) and a (1,TN) iota (single broadcast compare).
        r = row_start + lax.broadcasted_iota(jnp.int32, (tile_m, 1), 0)
        c = col_start + lax.broadcasted_iota(jnp.int32, (1, tile_n), 1)
        valid = jnp.logical_and(valid, r != c)
        out_ref[...] = jnp.where(valid, negd2, _NEG_INF)


def _masked_neg_sq_dists_padded(pos, graph_id, *, cutoff=float("inf")):
    """Padded (n_pad, n_pad) matrix of -d^2 for valid pairs, -inf elsewhere."""
    n, ndim = pos.shape

    # Pad N only to a multiple of 128, then pick the largest tile sizes that
    # divide it: lane-dense unmasked stores without inflating the N^2 f32 HBM
    # write (the kernel's real bound) with padded tiles.
    n_pad = _round_up(max(n, 1), 128)
    tile_n = max(t for t in (512, 256, 128) if n_pad % t == 0)
    tile_m = max(t for t in (256, 128) if n_pad % t == 0)
    # 256x512 f32 output tile = 512 KiB: trivially fits even v7x's 64 MiB VMEM
    # when double-buffered together with the tiny pos / graph-id tiles.

    pos_f = jnp.zeros((n_pad, ndim), jnp.float32).at[:n].set(pos.astype(jnp.float32))
    # Padded nodes get a LARGE sentinel id: keeps the batch vector sorted for
    # the scalar endpoint test and never matches a real node's graph id.
    gid = jnp.full((n_pad,), _PAD_GID, jnp.int32).at[:n].set(graph_id.astype(jnp.int32))
    pos_t = pos_f.T                                  # (D, n_pad): lane-dense col side
    gid_col = gid.reshape(n_pad, 1)
    gid_row = gid.reshape(1, n_pad)

    kernel = functools.partial(_neg_sq_dist_kernel,
                               cutoff_sq=float(cutoff) * float(cutoff),
                               tile_m=tile_m, tile_n=tile_n, ndim=ndim)

    return pl.pallas_call(
        kernel,
        out_shape=jax.ShapeDtypeStruct((n_pad, n_pad), jnp.float32),
        grid=(n_pad // tile_m, n_pad // tile_n),
        in_specs=[
            pl.BlockSpec((tile_m, ndim), lambda i, j: (i, 0)),   # row positions
            pl.BlockSpec((ndim, tile_n), lambda i, j: (0, j)),   # col positions (pos^T)
            pl.BlockSpec((tile_m, 1), lambda i, j: (i, 0)),      # row graph ids
            pl.BlockSpec((1, tile_n), lambda i, j: (0, j)),      # col graph ids
        ],
        out_specs=pl.BlockSpec((tile_m, tile_n), lambda i, j: (i, j)),
        compiler_params=pltpu.CompilerParams(
            dimension_semantics=("parallel", "parallel")),
    )(pos_f, pos_t, gid_col, gid_row)


def masked_neg_sq_dists(pos, graph_id, *, cutoff=float("inf")):
    """(N, N) view of the padded result (testing/reference convenience)."""
    n = pos.shape[0]
    return _masked_neg_sq_dists_padded(pos, graph_id, cutoff=cutoff)[:n, :n]


def add_edge_index(pos, graph_id, *, n_neighbors=None, cutoff=None):
    """AddEdgeIndex.generate_edge_index: per-node nearest same-graph neighbors
    within `cutoff`.  Returns [2, N*k] int32 (k = min(n_neighbors, N-1));
    padded entries are -1.  edge_index[0] = neighbor j, edge_index[1] = center i.
    """
    n_neighbors = 10000 if n_neighbors is None else int(n_neighbors)
    cutoff = float("inf") if cutoff is None else float(cutoff)

    n = pos.shape[0]
    k = min(n_neighbors, n - 1)
    if k <= 0:                                       # N == 1 or n_neighbors == 0
        return jnp.zeros((2, 0), jnp.int32)

    # top_k runs on the padded matrix (padded columns are -inf so never chosen
    # over real candidates); only the small (n_pad, k) result is sliced, which
    # avoids a full-N^2 strided-slice pass before top_k.
    neg = _masked_neg_sq_dists_padded(pos, graph_id, cutoff=cutoff)
    vals, nbr = lax.top_k(neg, k)                    # largest negated = nearest
    vals, nbr = vals[:n], nbr[:n]
    valid = jnp.isfinite(vals)                       # -inf => masked pair

    center = jnp.broadcast_to(jnp.arange(n, dtype=jnp.int32)[:, None], (n, k))
    src = jnp.where(valid, nbr.astype(jnp.int32), -1).reshape(-1)
    dst = jnp.where(valid, center, -1).reshape(-1)
    # TODO(synk): for very large N a streaming in-kernel k-selection (col axis
    # as an "arbitrary" reduction with a (TM, k) VMEM accumulator) would avoid
    # materializing (N, N) and the top_k re-read; kept host-side lax.top_k here.
    return jnp.stack([src, dst], axis=0)


# ---------------------------------------------------------------------------
if __name__ == "__main__":
    key = jax.random.PRNGKey(0)
    k_pos, k_feat, k_w, k_b = jax.random.split(key, 4)

    # Small shapes: 2 graphs x 8 nodes, 3-D positions, 4 scalars/node, embed=8.
    n_per_graph, n_graphs, ndim = 8, 2, 3
    n = n_per_graph * n_graphs
    f_in, embed_dim = 4, 8

    batch = {
        "pos": jax.random.normal(k_pos, (n, ndim), dtype=jnp.float32),
        "batch": jnp.repeat(jnp.arange(n_graphs, dtype=jnp.int32), n_per_graph),
        "scalars": jax.random.normal(k_feat, (n, f_in), dtype=jnp.float32),
    }
    weight = jax.random.normal(k_w, (f_in, embed_dim), dtype=jnp.float32)
    bias = jax.random.normal(k_b, (1, embed_dim), dtype=jnp.float32)

    # ---- InvariantFeatures forward: first call creates, second concatenates.
    module = InvariantFeatures("scalars", type_="node", weight=weight, bias=bias)
    batch = module(batch)        # invariant_node_features: (n, 8)
    batch = module(batch)        # invariant_node_features: (n, 16)
    feats = jax.block_until_ready(batch["invariant_node_features"])
    assert feats.shape == (n, 2 * embed_dim)
    ref_emb = jnp.dot(batch["scalars"], weight,
                      precision=lax.Precision.HIGHEST) + bias
    ref_feats = jnp.concatenate([ref_emb, ref_emb], axis=-1)
    assert bool(jnp.all(jnp.abs(feats - ref_feats) < 1e-3))

    # ---- Pairwise-distance kernel vs pure-JAX reference.
    cutoff = 2.5
    p, gid = batch["pos"], batch["batch"]
    neg = jax.block_until_ready(masked_neg_sq_dists(p, gid, cutoff=cutoff))
    d2_ref = jnp.sum((p[:, None, :] - p[None, :, :]) ** 2, axis=-1)
    mask_ref = ((gid[:, None] == gid[None, :])
                & ~jnp.eye(n, dtype=bool)
                & (d2_ref <= cutoff * cutoff))
    ref_neg = jnp.where(mask_ref, -d2_ref, -jnp.inf)
    assert bool(jnp.all(jnp.isfinite(neg) == jnp.isfinite(ref_neg)))
    diff = jnp.where(jnp.isfinite(ref_neg), jnp.abs(neg - ref_neg), 0.0)
    assert bool(jnp.all(diff < 1e-4))

    # ---- Edge-index extraction on top of the kernel.
    kk = 5
    edge_index = jax.block_until_ready(
        add_edge_index(p, gid, n_neighbors=kk, cutoff=cutoff))
    assert edge_index.shape == (2, n * kk)
    assert edge_index.dtype == jnp.int32
    src, dst = edge_index[0], edge_index[1]
    valid_e = src >= 0
    s_cl, d_cl = jnp.clip(src, 0, n - 1), jnp.clip(dst, 0, n - 1)
    assert bool(jnp.all(jnp.where(valid_e, gid[s_cl] == gid[d_cl], True)))
    assert bool(jnp.all(jnp.where(valid_e, src != dst, True)))
    d2_sel = jnp.sum((p[s_cl] - p[d_cl]) ** 2, axis=-1)
    assert bool(jnp.all(jnp.where(valid_e, d2_sel <= cutoff * cutoff + 1e-5, True)))
    counts_ref = jnp.minimum(jnp.sum(mask_ref, axis=1), kk)
    counts_got = jnp.sum(valid_e.reshape(n, kk), axis=1)
    assert bool(jnp.all(counts_got == counts_ref))

    print("KERNEL_OK")
</pallas_src>

<mosaic_0001>
module attributes {stable_mosaic.version = 11 : i64} {
  func.func @_embed_kernel(%arg0: i32, %arg1: memref<16x4xf32, #tpu.memory_space<vmem>>, %arg2: memref<4x8xf32, #tpu.memory_space<vmem>>, %arg3: memref<1x8xf32, #tpu.memory_space<vmem>>, %arg4: memref<16x8xf32, #tpu.memory_space<vmem>>) attributes {dimension_semantics = [#tpu.dimension_semantics<parallel>], iteration_bounds = array<i64: 1>, scalar_prefetch = 0 : i64, scratch_operands = 0 : i64, tpu.core_type = #tpu.core_type<tc>, window_params = [{transform_indices = @transform_0, window_bounds = array<i64: 16, 4>}, {pipeline_mode = #tpu.pipeline_mode<synchronous>, transform_indices = @transform_1, window_bounds = array<i64: 4, 8>}, {pipeline_mode = #tpu.pipeline_mode<synchronous>, transform_indices = @transform_2, window_bounds = array<i64: 1, 8>}, {transform_indices = @transform_3, window_bounds = array<i64: 16, 8>}]} {
    %c0 = arith.constant 0 : index
    %c0_0 = arith.constant 0 : index
    %0 = vector.load %arg1[%c0, %c0_0] : memref<16x4xf32, #tpu.memory_space<vmem>>, vector<16x4xf32>
    %c0_1 = arith.constant 0 : index
    %c0_2 = arith.constant 0 : index
    %1 = vector.load %arg2[%c0_1, %c0_2] : memref<4x8xf32, #tpu.memory_space<vmem>>, vector<4x8xf32>
    %c0_3 = arith.constant 0 : index
    %c0_4 = arith.constant 0 : index
    %2 = vector.load %arg3[%c0_3, %c0_4] : memref<1x8xf32, #tpu.memory_space<vmem>>, vector<1x8xf32>
    %cst = arith.constant 0.000000e+00 : f32
    %3 = vector.broadcast %cst : f32 to vector<16x8xf32>
    %4 = vector.extract_strided_slice %0 {offsets = [0, 0], sizes = [16, 1], strides = [1, 1]} : vector<16x4xf32> to vector<16x1xf32>
    %5 = vector.extract_strided_slice %1 {offsets = [0, 0], sizes = [1, 8], strides = [1, 1]} : vector<4x8xf32> to vector<1x8xf32>
    %6 = vector.broadcast %4 : vector<16x1xf32> to vector<16x8xf32>
    %7 = vector.broadcast %5 : vector<1x8xf32> to vector<16x8xf32>
    %8 = arith.mulf %6, %7 : vector<16x8xf32>
    %9 = arith.addf %3, %8 : vector<16x8xf32>
    %10 = vector.extract_strided_slice %0 {offsets = [0, 1], sizes = [16, 1], strides = [1, 1]} : vector<16x4xf32> to vector<16x1xf32>
    %11 = vector.extract_strided_slice %1 {offsets = [1, 0], sizes = [1, 8], strides = [1, 1]} : vector<4x8xf32> to vector<1x8xf32>
    %12 = vector.broadcast %10 : vector<16x1xf32> to vector<16x8xf32>
    %13 = vector.broadcast %11 : vector<1x8xf32> to vector<16x8xf32>
    %14 = arith.mulf %12, %13 : vector<16x8xf32>
    %15 = arith.addf %9, %14 : vector<16x8xf32>
    %16 = vector.extract_strided_slice %0 {offsets = [0, 2], sizes = [16, 1], strides = [1, 1]} : vector<16x4xf32> to vector<16x1xf32>
    %17 = vector.extract_strided_slice %1 {offsets = [2, 0], sizes = [1, 8], strides = [1, 1]} : vector<4x8xf32> to vector<1x8xf32>
    %18 = vector.broadcast %16 : vector<16x1xf32> to vector<16x8xf32>
    %19 = vector.broadcast %17 : vector<1x8xf32> to vector<16x8xf32>
    %20 = arith.mulf %18, %19 : vector<16x8xf32>
    %21 = arith.addf %15, %20 : vector<16x8xf32>
    %22 = vector.extract_strided_slice %0 {offsets = [0, 3], sizes = [16, 1], strides = [1, 1]} : vector<16x4xf32> to vector<16x1xf32>
    %23 = vector.extract_strided_slice %1 {offsets = [3, 0], sizes = [1, 8], strides = [1, 1]} : vector<4x8xf32> to vector<1x8xf32>
    %24 = vector.broadcast %22 : vector<16x1xf32> to vector<16x8xf32>
    %25 = vector.broadcast %23 : vector<1x8xf32> to vector<16x8xf32>
    %26 = arith.mulf %24, %25 : vector<16x8xf32>
    %27 = arith.addf %21, %26 : vector<16x8xf32>
    %28 = vector.broadcast %2 : vector<1x8xf32> to vector<16x8xf32>
    %29 = arith.addf %27, %28 : vector<16x8xf32>
    %c0_5 = arith.constant 0 : index
    %c0_6 = arith.constant 0 : index
    %30 = vector.load %arg4[%c0_5, %c0_6] : memref<16x8xf32, #tpu.memory_space<vmem>>, vector<16x8xf32>
    tpu.vector_store %arg4[%c0_5, %c0_6], %29 {strides = array<i32>} : memref<16x8xf32, #tpu.memory_space<vmem>>, vector<16x8xf32>,
    return
  }
  func.func @transform_0(%arg0: i32) -> (i32, i32) {
    %c0_i32 = arith.constant 0 : i32
    %c0_i32_0 = arith.constant 0 : i32
    return %arg0, %c0_i32 : i32, i32
  }
  func.func @transform_1(%arg0: i32) -> (i32, i32) {
    %c0_i32 = arith.constant 0 : i32
    %c0_i32_0 = arith.constant 0 : i32
    %c0_i32_1 = arith.constant 0 : i32
    return %c0_i32, %c0_i32_0 : i32, i32
  }
  func.func @transform_2(%arg0: i32) -> (i32, i32) {
    %c0_i32 = arith.constant 0 : i32
    %c0_i32_0 = arith.constant 0 : i32
    %c0_i32_1 = arith.constant 0 : i32
    return %c0_i32, %c0_i32_0 : i32, i32
  }
  func.func @transform_3(%arg0: i32) -> (i32, i32) {
    %c0_i32 = arith.constant 0 : i32
    %c0_i32_0 = arith.constant 0 : i32
    return %arg0, %c0_i32 : i32, i32
  }
}

</mosaic_0001>

<bundles_post_ra>
// kernel: tpu_custom_call.1
= control target key start
LH: loop header
LB: loop body
LE: loop exit
PB: predicated region body
PF: predicated region fallthrough
CT: control target
= control target key end

     0   :  { %v110_v0 = vmov 1   ;;  %v111_v1 = vmov 0   ;;  %v112_v4 = vmov 2   ;;  %v113_v5 = vmov 3   ;;  %s152_s0 = inlined_call_operand.vmem [shape: f32[16,4], index: 0, kind: input, shape index: {}]   ;;  %s153_s1 = inlined_call_operand.vmem [shape: f32[4,8], index: 1, kind: input, shape index: {}]   ;;  %s154_s2 = inlined_call_operand.vmem [shape: f32[1,8], index: 2, kind: input, shape index: {}]   ;;  %s155_s3 = inlined_call_operand.vmem [shape: f32[16,8], index: 3, kind: output, shape index: {}]  }
   0x1   :  { %105 = vset.pattern.permute.xlu1 %v110_v0  ;;  %104 = vset.pattern.permute.xlu0 %v111_v1  ;;  %v14_v2 = vld [vmem:[%s152_s0] sm:$0xff]  ;;  %v15_v3 = vld [vmem:[%s152_s0 + $0x8] sm:$0xff]  ;;  %v28_v6 = vlaneseq  ;;  %vm92_vm0 = vcmask 64512  }
   0x2   :  { %37 = vperm.xlu1 %105, %v14_v2   ;;  %20 = vperm.xlu0 %104, %v14_v2   ;;  %v16_v12 = vld [vmem:[%s153_s1] sm:$0xf] }
   0x3   :  { %v29_v7 = vshrl.u32 %v28_v6, 7  ;;  %v99_v37 = vld [vmem:[%s154_s2] ss:$0 sm:$0xff] }
   0x5   :  { %v46_v10 = vsub.s32 1, %v29_v7  ;;  %v30_v11 = vsub.s32 0, %v29_v7  ;;  %v62_v13 = vsub.s32 2, %v29_v7  ;;  %v78_v19 = vsub.s32 3, %v29_v7 }
   0x6   :  { %41 = vperm.xlu1 %105, %v15_v3   ;;  %25 = vperm.xlu0 %104, %v15_v3  }
   0x7   :  { %v47_v16 = vrot.slane %v16_v12, %v46_v10  ;;  %v31_v17 = vrot.slane %v16_v12, %v30_v11  ;;  %v63_v18 = vrot.slane %v16_v12, %v62_v13  ;;  %v79_v28 = vrot.slane %v16_v12, %v78_v19 }
   0xa   :  { %107 = vset.pattern.permute.xlu1 %v112_v4  ;;  %106 = vset.pattern.permute.xlu0 %v112_v4 }
   0xb   :  { %57 = vperm.xlu1 %107, %v15_v3   ;;  %53 = vperm.xlu0 %106, %v14_v2  }
   0xf   :  { %108 = vset.pattern.permute.xlu1 %v113_v5  ;;  %109 = vset.pattern.permute.xlu0 %v113_v5 }
  0x10   :  { %69 = vperm.xlu1 %108, %v14_v2   ;;  %73 = vperm.xlu0 %109, %v15_v3  }
  0x7d   :  { %v38_v8 = vpop.permute.xlu1 %37  ;;  %v21_v9 = vpop.permute.xlu0 %20 }
  0x7e   :  { %v48_v20 = vmul.f32 %v47_v16, %v38_v8  ;;  %v32_v21 = vmul.f32 %v31_v17, %v21_v9 }
  0x80   :  { %v50_v29 = vadd.f32 %v48_v20, %v32_v21 }
  0x81   :  { %v42_v14 = vpop.permute.xlu1 %41  ;;  %v26_v15 = vpop.permute.xlu0 %25 }
  0x82   :  { %v49_v22 = vmul.f32 %v47_v16, %v42_v14  ;;  %v33_v23 = vmul.f32 %v31_v17, %v26_v15 }
  0x84   :  { %v51_v30 = vadd.f32 %v49_v22, %v33_v23 }
  0x86   :  { %v58_v24 = vpop.permute.xlu1 %57  ;;  %v54_v25 = vpop.permute.xlu0 %53 }
  0x87   :  { %v65_v26 = vmul.f32 %v63_v18, %v58_v24  ;;  %v64_v27 = vmul.f32 %v63_v18, %v54_v25 }
  0x89   :  { %v67_v33 = vadd.f32 %v65_v26, %v51_v30  ;;  %v66_v34 = vadd.f32 %v64_v27, %v50_v29 }
  0x8b   :  { %v70_v31 = vpop.permute.xlu1 %69  ;;  %v74_v32 = vpop.permute.xlu0 %73 }
  0x8c   :  { %v80_v35 = vmul.f32 %v79_v28, %v70_v31  ;;  %v81_v36 = vmul.f32 %v79_v28, %v74_v32 }
  0x8e   :  { %v82_v38 = vadd.f32 %v80_v35, %v66_v34  ;;  %v83_v39 = vadd.f32 %v81_v36, %v67_v33 }
  0x90   :  { %v90_v40 = vadd.f32 %v99_v37, %v82_v38  ;;  %v91_v41 = vadd.f32 %v99_v37, %v83_v39 }
  0x92   :  { %93 = vst.msk [vmem:[%s155_s3] sm:$0xff] %vm92_vm0, %v90_v40  ;;  %94 = vst.msk [vmem:[%s155_s3 + $0x8] sm:$0xff] %vm92_vm0, %v91_v41 }

</bundles_post_ra>
